<compile_context>
chip_gen: v6e
topology: v6e:2x2x1
jax: 0.10.0
libtpu: 0.0.40
codegen_flags: <defaults>
</compile_context>

<pallas_src>
import functools
import math

import jax
import jax.numpy as jnp
from jax.experimental import pallas as pl
from jax.experimental.pallas import tpu as pltpu


# ---------------------------------------------------------------------------
# tiling helper
# ---------------------------------------------------------------------------
def _tile_dim(n: int, preferred: int, align: int) -> int:
    """Largest tile <= `preferred` that divides n and is a multiple of `align`.
    Falls back to the full dimension (always a legal block size)."""
    if n <= preferred or n % align != 0:
        return n
    t = (min(preferred, n) // align) * align
    while t >= align:
        if n % t == 0:
            return t
        t -= align
    return n


# ---------------------------------------------------------------------------
# LayerNorm
# ---------------------------------------------------------------------------
def _layernorm_kernel(x_ref, g_ref, b_ref, o_ref, *, eps):
    x = x_ref[...].astype(jnp.float32)
    mean = jnp.mean(x, axis=-1, keepdims=True)
    xc = x - mean
    var = jnp.mean(xc * xc, axis=-1, keepdims=True)
    inv = jax.lax.rsqrt(var + eps)
    o_ref[...] = (xc * inv * g_ref[...] + b_ref[...]).astype(o_ref.dtype)


def layer_norm(x, gamma, beta, eps=1e-5):
    orig_shape = x.shape
    D = orig_shape[-1]
    x2 = x.reshape(-1, D)
    M = x2.shape[0]
    tm = _tile_dim(M, 512, 8)
    out = pl.pallas_call(
        functools.partial(_layernorm_kernel, eps=eps),
        out_shape=jax.ShapeDtypeStruct((M, D), x.dtype),
        grid_spec=pltpu.PrefetchScalarGridSpec(
            num_scalar_prefetch=0,
            grid=(M // tm,),
            in_specs=[
                pl.BlockSpec((tm, D), lambda i: (i, 0)),
                pl.BlockSpec((1, D), lambda i: (0, 0)),
                pl.BlockSpec((1, D), lambda i: (0, 0)),
            ],
            out_specs=pl.BlockSpec((tm, D), lambda i: (i, 0)),
        ),
        compiler_params=pltpu.CompilerParams(dimension_semantics=("parallel",)),
    )(x2, gamma.reshape(1, D), beta.reshape(1, D))
    return out.reshape(orig_shape)


# ---------------------------------------------------------------------------
# Linear (matmul + bias, optional fused ReLU / residual add)
# ---------------------------------------------------------------------------
def _linear_kernel(*refs, activation, has_residual):
    if has_residual:
        x_ref, w_ref, b_ref, r_ref, o_ref, acc_ref = refs
    else:
        x_ref, w_ref, b_ref, o_ref, acc_ref = refs
        r_ref = None

    @pl.when(pl.program_id(2) == 0)
    def _():
        acc_ref[...] = jnp.zeros_like(acc_ref)

    acc_ref[...] += jnp.dot(x_ref[...], w_ref[...],
                            preferred_element_type=jnp.float32)

    @pl.when(pl.program_id(2) == pl.num_programs(2) - 1)
    def _():
        out = acc_ref[...] + b_ref[...].astype(jnp.float32)
        if activation == "relu":
            out = jnp.maximum(out, 0.0)
        if r_ref is not None:
            out = out + r_ref[...].astype(jnp.float32)
        o_ref[...] = out.astype(o_ref.dtype)


def linear(x, w, b, activation=None, residual=None):
    """x: (M, K), w: (K, N), b: (N,).  Optional fused ReLU and residual add."""
    M, K = x.shape
    _, N = w.shape
    tm = _tile_dim(M, 512, 8)
    tn = _tile_dim(N, 512, 128)
    tk = _tile_dim(K, 512, 128)
    has_residual = residual is not None

    in_specs = [
        pl.BlockSpec((tm, tk), lambda i, j, k: (i, k)),
        pl.BlockSpec((tk, tn), lambda i, j, k: (k, j)),
        pl.BlockSpec((1, tn), lambda i, j, k: (0, j)),
    ]
    args = [x, w, b.reshape(1, N)]
    if has_residual:
        in_specs.append(pl.BlockSpec((tm, tn), lambda i, j, k: (i, j)))
        args.append(residual)

    return pl.pallas_call(
        functools.partial(_linear_kernel, activation=activation,
                          has_residual=has_residual),
        out_shape=jax.ShapeDtypeStruct((M, N), x.dtype),
        grid_spec=pltpu.PrefetchScalarGridSpec(
            num_scalar_prefetch=0,
            grid=(M // tm, N // tn, K // tk),
            in_specs=in_specs,
            out_specs=pl.BlockSpec((tm, tn), lambda i, j, k: (i, j)),
            scratch_shapes=[pltpu.VMEM((tm, tn), jnp.float32)],
        ),
        compiler_params=pltpu.CompilerParams(
            dimension_semantics=("parallel", "parallel", "arbitrary"),
        ),
    )(*args)


# ---------------------------------------------------------------------------
# Scaled-dot-product attention (per batch, per head)
# ---------------------------------------------------------------------------
def _attention_kernel(*refs, scale, with_weights):
    if with_weights:
        q_ref, k_ref, v_ref, m_ref, o_ref, w_ref = refs
    else:
        q_ref, k_ref, v_ref, m_ref, o_ref = refs
        w_ref = None

    q = q_ref[...].astype(jnp.float32)
    k = k_ref[...].astype(jnp.float32)
    # (Lq, dh) . (Lk, dh)^T  without materializing the transpose
    s = jax.lax.dot_general(q, k, (((1,), (1,)), ((), ())),
                            preferred_element_type=jnp.float32) * scale
    s = s + m_ref[...]
    s = s - jnp.max(s, axis=-1, keepdims=True)
    p = jnp.exp(s)
    p = p / jnp.sum(p, axis=-1, keepdims=True)
    o_ref[...] = jnp.dot(p, v_ref[...].astype(jnp.float32),
                         preferred_element_type=jnp.float32).astype(o_ref.dtype)
    if w_ref is not None:
        w_ref[...] = p.astype(w_ref.dtype)


def _attention(q, k, v, mask, need_weights):
    """q: (B,H,Lq,dh), k/v: (B,H,Lk,dh), mask: (Lq,Lk) additive float."""
    B, H, Lq, dh = q.shape
    Lk = k.shape[2]
    scale = 1.0 / math.sqrt(dh)

    qo_spec = pl.BlockSpec((None, None, Lq, dh), lambda b, h: (b, h, 0, 0))
    kv_spec = pl.BlockSpec((None, None, Lk, dh), lambda b, h: (b, h, 0, 0))
    m_spec = pl.BlockSpec((Lq, Lk), lambda b, h: (0, 0))

    out_shape = [jax.ShapeDtypeStruct((B, H, Lq, dh), q.dtype)]
    out_specs = [qo_spec]
    if need_weights:
        out_shape.append(jax.ShapeDtypeStruct((B, H, Lq, Lk), jnp.float32))
        out_specs.append(pl.BlockSpec((None, None, Lq, Lk),
                                      lambda b, h: (b, h, 0, 0)))

    res = pl.pallas_call(
        functools.partial(_attention_kernel, scale=scale,
                          with_weights=need_weights),
        out_shape=tuple(out_shape),
        grid_spec=pltpu.PrefetchScalarGridSpec(
            num_scalar_prefetch=0,
            grid=(B, H),
            in_specs=[qo_spec, kv_spec, kv_spec, m_spec],
            out_specs=out_specs,
        ),
        compiler_params=pltpu.CompilerParams(
            dimension_semantics=("parallel", "parallel"),
        ),
    )(q, k, v, mask)
    if need_weights:
        return res[0], res[1]
    return res[0], None


# ---------------------------------------------------------------------------
# Multi-head attention block (nn.MultiheadAttention, batch_first=True, eval)
# ---------------------------------------------------------------------------
def mha_block(q_in, kv_in, p, nhead, attn_mask=None, need_weights=False,
              residual=None):
    B, Lq, D = q_in.shape
    Lk = kv_in.shape[1]
    dh = D // nhead

    in_wT = p["in_w"].T            # PyTorch stores (3D, D); we use (D, 3D)
    in_b = p["in_b"]
    x_q = q_in.reshape(B * Lq, D)

    if q_in is kv_in:
        # self-attention: single fused QKV projection
        qkv = linear(x_q, in_wT, in_b)                        # (B*Lq, 3D)
        q, k, v = jnp.split(qkv, 3, axis=-1)
    else:
        x_kv = kv_in.reshape(B * Lk, D)
        q = linear(x_q, in_wT[:, :D], in_b[:D])               # (B*Lq, D)
        kv = linear(x_kv, in_wT[:, D:], in_b[D:])             # (B*Lk, 2D)
        k, v = jnp.split(kv, 2, axis=-1)

    q = q.reshape(B, Lq, nhead, dh).transpose(0, 2, 1, 3)
    k = k.reshape(B, Lk, nhead, dh).transpose(0, 2, 1, 3)
    v = v.reshape(B, Lk, nhead, dh).transpose(0, 2, 1, 3)

    if attn_mask is None:
        mask = jnp.zeros((Lq, Lk), jnp.float32)
    elif attn_mask.dtype == jnp.bool_:
        mask = jnp.where(attn_mask, -1e9, 0.0).astype(jnp.float32)
    else:
        mask = attn_mask.astype(jnp.float32)

    ctx, attn_w = _attention(q, k, v, mask, need_weights)

    ctx = ctx.transpose(0, 2, 1, 3).reshape(B * Lq, D)
    out = linear(ctx, p["out_w"].T, p["out_b"],
                 residual=None if residual is None
                 else residual.reshape(B * Lq, D))
    out = out.reshape(B, Lq, D)

    if need_weights:
        # PyTorch default average_attn_weights=True -> mean over heads
        attn_w = jnp.mean(attn_w, axis=1)
    return out, attn_w


# ---------------------------------------------------------------------------
# DecoderLayerAlign forward
# ---------------------------------------------------------------------------
def decoder_layer_align_forward(params, y, p_dec, memory, nhead,
                                tgt_mask=None, memory_mask=None):
    # TODO(synk): nn.Dropout (attention-weight and FFN dropout) is identity in
    # inference/eval mode; training-mode stochastic dropout is not implemented.
    B, L, D = y.shape

    # 1) masked self-attention (pre-norm); residual fused into the out-proj
    yn = layer_norm(y, params["norm1"]["g"], params["norm1"]["b"])
    y, _ = mha_block(yn, yn, params["self_attn"], nhead,
                     attn_mask=tgt_mask, residual=y)

    # 2) pitch attention (q from y, k/v from p_dec)
    yn = layer_norm(y, params["norm2"]["g"], params["norm2"]["b"])
    y, _ = mha_block(yn, p_dec, params["pitch_attn"], nhead, residual=y)

    # 3) cross attention (returns head-averaged attention weights)
    yn = layer_norm(y, params["norm3"]["g"], params["norm3"]["b"])
    y, att_w = mha_block(yn, memory, params["cross_attn"], nhead,
                         attn_mask=memory_mask, need_weights=True, residual=y)

    # 4) FFN (pre-norm): ReLU fused into first matmul, residual into second
    yn = layer_norm(y, params["norm4"]["g"], params["norm4"]["b"])
    h = linear(yn.reshape(B * L, D), params["ffn"]["w1"].T, params["ffn"]["b1"],
               activation="relu")
    y = linear(h, params["ffn"]["w2"].T, params["ffn"]["b2"],
               residual=y.reshape(B * L, D)).reshape(B, L, D)
    return y, att_w


# ---------------------------------------------------------------------------
# Parameter init + pure-JAX reference for checking
# ---------------------------------------------------------------------------
def init_params(key, d_model, nhead, dim_ff):
    ks = jax.random.split(key, 3)

    def attn_params(k):
        k1, k2, k3, k4 = jax.random.split(k, 4)
        return {
            "in_w": 0.1 * jax.random.normal(k1, (3 * d_model, d_model), jnp.float32),
            "in_b": 0.1 * jax.random.normal(k2, (3 * d_model,), jnp.float32),
            "out_w": 0.1 * jax.random.normal(k3, (d_model, d_model), jnp.float32),
            "out_b": 0.1 * jax.random.normal(k4, (d_model,), jnp.float32),
        }

    def ln_params(k):
        k1, k2 = jax.random.split(k)
        return {"g": 1.0 + 0.1 * jax.random.normal(k1, (d_model,), jnp.float32),
                "b": 0.1 * jax.random.normal(k2, (d_model,), jnp.float32)}

    k_attn = jax.random.split(ks[0], 3)
    k_ln = jax.random.split(ks[1], 4)
    k_ffn = jax.random.split(ks[2], 4)
    return {
        "self_attn": attn_params(k_attn[0]),
        "pitch_attn": attn_params(k_attn[1]),
        "cross_attn": attn_params(k_attn[2]),
        "norm1": ln_params(k_ln[0]),
        "norm2": ln_params(k_ln[1]),
        "norm3": ln_params(k_ln[2]),
        "norm4": ln_params(k_ln[3]),
        "ffn": {
            "w1": 0.1 * jax.random.normal(k_ffn[0], (dim_ff, d_model), jnp.float32),
            "b1": 0.1 * jax.random.normal(k_ffn[1], (dim_ff,), jnp.float32),
            "w2": 0.1 * jax.random.normal(k_ffn[2], (d_model, dim_ff), jnp.float32),
            "b2": 0.1 * jax.random.normal(k_ffn[3], (d_model,), jnp.float32),
        },
    }


def _reference_forward(params, y, p_dec, memory, nhead,
                       tgt_mask=None, memory_mask=None):
    def ln(x, pr, eps=1e-5):
        m = jnp.mean(x, -1, keepdims=True)
        v = jnp.mean((x - m) ** 2, -1, keepdims=True)
        return (x - m) / jnp.sqrt(v + eps) * pr["g"] + pr["b"]

    def mha(q_in, kv_in, p, mask=None):
        B, Lq, D = q_in.shape
        Lk = kv_in.shape[1]
        dh = D // nhead
        wq, wk, wv = jnp.split(p["in_w"], 3, axis=0)
        bq, bk, bv = jnp.split(p["in_b"], 3)
        q = q_in @ wq.T + bq
        k = kv_in @ wk.T + bk
        v = kv_in @ wv.T + bv
        q = q.reshape(B, Lq, nhead, dh).transpose(0, 2, 1, 3)
        k = k.reshape(B, Lk, nhead, dh).transpose(0, 2, 1, 3)
        v = v.reshape(B, Lk, nhead, dh).transpose(0, 2, 1, 3)
        s = jnp.einsum("bhqd,bhkd->bhqk", q, k) / math.sqrt(dh)
        if mask is not None:
            s = s + mask
        w = jax.nn.softmax(s, axis=-1)
        ctx = jnp.einsum("bhqk,bhkd->bhqd", w, v)
        ctx = ctx.transpose(0, 2, 1, 3).reshape(B, Lq, D)
        return ctx @ p["out_w"].T + p["out_b"], jnp.mean(w, axis=1)

    yn = ln(y, params["norm1"])
    h, _ = mha(yn, yn, params["self_attn"], tgt_mask)
    y = y + h
    yn = ln(y, params["norm2"])
    h, _ = mha(yn, p_dec, params["pitch_attn"], None)
    y = y + h
    yn = ln(y, params["norm3"])
    h, att_w = mha(yn, memory, params["cross_attn"], memory_mask)
    y = y + h
    yn = ln(y, params["norm4"])
    f = jnp.maximum(yn @ params["ffn"]["w1"].T + params["ffn"]["b1"], 0.0)
    f = f @ params["ffn"]["w2"].T + params["ffn"]["b2"]
    return y + f, att_w


if __name__ == "__main__":
    key = jax.random.PRNGKey(0)
    B, L, Lp, Lm = 2, 8, 12, 10
    d_model, nhead, dim_ff = 32, 4, 64

    k_param, k_y, k_p, k_m = jax.random.split(key, 4)
    params = init_params(k_param, d_model, nhead, dim_ff)
    y = jax.random.normal(k_y, (B, L, d_model), jnp.float32)
    p_dec = jax.random.normal(k_p, (B, Lp, d_model), jnp.float32)
    memory = jax.random.normal(k_m, (B, Lm, d_model), jnp.float32)

    # causal target mask (additive float, large negative above the diagonal)
    tgt_mask = jnp.where(jnp.triu(jnp.ones((L, L), dtype=bool), k=1),
                         -1e9, 0.0).astype(jnp.float32)

    out, att_w = decoder_layer_align_forward(params, y, p_dec, memory, nhead,
                                             tgt_mask=tgt_mask, memory_mask=None)
    out = jax.block_until_ready(out)
    att_w = jax.block_until_ready(att_w)

    ref_out, ref_w = _reference_forward(params, y, p_dec, memory, nhead,
                                        tgt_mask=tgt_mask, memory_mask=None)

    assert out.shape == (B, L, d_model)
    assert att_w.shape == (B, L, Lm)
    assert jnp.allclose(out, ref_out, atol=2e-4, rtol=2e-4), "output mismatch"
    assert jnp.allclose(att_w, ref_w, atol=1e-4, rtol=1e-4), "attn-weight mismatch"

    print("KERNEL_OK")
</pallas_src>

<mosaic_0001>
module attributes {stable_mosaic.version = 11 : i64} {
  func.func @_layernorm_kernel(%arg0: i32, %arg1: memref<16x32xf32, #tpu.memory_space<vmem>>, %arg2: memref<1x32xf32, #tpu.memory_space<vmem>>, %arg3: memref<1x32xf32, #tpu.memory_space<vmem>>, %arg4: memref<16x32xf32, #tpu.memory_space<vmem>>) attributes {dimension_semantics = [#tpu.dimension_semantics<parallel>], iteration_bounds = array<i64: 1>, scalar_prefetch = 0 : i64, scratch_operands = 0 : i64, tpu.core_type = #tpu.core_type<tc>, window_params = [{transform_indices = @transform_0, window_bounds = array<i64: 16, 32>}, {pipeline_mode = #tpu.pipeline_mode<synchronous>, transform_indices = @transform_1, window_bounds = array<i64: 1, 32>}, {pipeline_mode = #tpu.pipeline_mode<synchronous>, transform_indices = @transform_2, window_bounds = array<i64: 1, 32>}, {transform_indices = @transform_3, window_bounds = array<i64: 16, 32>}]} {
    %c0 = arith.constant 0 : index
    %c0_0 = arith.constant 0 : index
    %0 = vector.load %arg1[%c0, %c0_0] : memref<16x32xf32, #tpu.memory_space<vmem>>, vector<16x32xf32>
    %cst = arith.constant dense<0.000000e+00> : vector<16xf32>
    %1 = vector.multi_reduction <add>, %0, %cst [1] : vector<16x32xf32> to vector<16xf32>
    %2 = vector.shape_cast %1 : vector<16xf32> to vector<16x1xf32>
    %cst_1 = arith.constant 3.200000e+01 : f32
    %3 = vector.broadcast %cst_1 : f32 to vector<16x1xf32>
    %4 = arith.divf %2, %3 : vector<16x1xf32>
    %5 = vector.broadcast %4 : vector<16x1xf32> to vector<16x32xf32>
    %6 = arith.subf %0, %5 : vector<16x32xf32>
    %7 = arith.mulf %6, %6 : vector<16x32xf32>
    %cst_2 = arith.constant dense<0.000000e+00> : vector<16xf32>
    %8 = vector.multi_reduction <add>, %7, %cst_2 [1] : vector<16x32xf32> to vector<16xf32>
    %9 = vector.shape_cast %8 : vector<16xf32> to vector<16x1xf32>
    %cst_3 = arith.constant 3.200000e+01 : f32
    %10 = vector.broadcast %cst_3 : f32 to vector<16x1xf32>
    %11 = arith.divf %9, %10 : vector<16x1xf32>
    %cst_4 = arith.constant 9.99999974E-6 : f32
    %12 = vector.broadcast %cst_4 : f32 to vector<16x1xf32>
    %13 = arith.addf %11, %12 : vector<16x1xf32>
    %14 = math.rsqrt %13 : vector<16x1xf32>
    %15 = vector.broadcast %14 : vector<16x1xf32> to vector<16x32xf32>
    %16 = arith.mulf %6, %15 : vector<16x32xf32>
    %c0_5 = arith.constant 0 : index
    %c0_6 = arith.constant 0 : index
    %17 = vector.load %arg2[%c0_5, %c0_6] : memref<1x32xf32, #tpu.memory_space<vmem>>, vector<1x32xf32>
    %18 = vector.broadcast %17 : vector<1x32xf32> to vector<16x32xf32>
    %19 = arith.mulf %16, %18 : vector<16x32xf32>
    %c0_7 = arith.constant 0 : index
    %c0_8 = arith.constant 0 : index
    %20 = vector.load %arg3[%c0_7, %c0_8] : memref<1x32xf32, #tpu.memory_space<vmem>>, vector<1x32xf32>
    %21 = vector.broadcast %20 : vector<1x32xf32> to vector<16x32xf32>
    %22 = arith.addf %19, %21 : vector<16x32xf32>
    %c0_9 = arith.constant 0 : index
    %c0_10 = arith.constant 0 : index
    %23 = vector.load %arg4[%c0_9, %c0_10] : memref<16x32xf32, #tpu.memory_space<vmem>>, vector<16x32xf32>
    tpu.vector_store %arg4[%c0_9, %c0_10], %22 {strides = array<i32>} : memref<16x32xf32, #tpu.memory_space<vmem>>, vector<16x32xf32>,
    return
  }
  func.func @transform_0(%arg0: i32) -> (i32, i32) {
    %c0_i32 = arith.constant 0 : i32
    %c0_i32_0 = arith.constant 0 : i32
    return %arg0, %c0_i32 : i32, i32
  }
  func.func @transform_1(%arg0: i32) -> (i32, i32) {
    %c0_i32 = arith.constant 0 : i32
    %c0_i32_0 = arith.constant 0 : i32
    %c0_i32_1 = arith.constant 0 : i32
    return %c0_i32, %c0_i32_0 : i32, i32
  }
  func.func @transform_2(%arg0: i32) -> (i32, i32) {
    %c0_i32 = arith.constant 0 : i32
    %c0_i32_0 = arith.constant 0 : i32
    %c0_i32_1 = arith.constant 0 : i32
    return %c0_i32, %c0_i32_0 : i32, i32
  }
  func.func @transform_3(%arg0: i32) -> (i32, i32) {
    %c0_i32 = arith.constant 0 : i32
    %c0_i32_0 = arith.constant 0 : i32
    return %arg0, %c0_i32 : i32, i32
  }
}

</mosaic_0001>

<bundles_post_ra>
// kernel: tpu_custom_call.1
= control target key start
LH: loop header
LB: loop body
LE: loop exit
PB: predicated region body
PF: predicated region fallthrough
CT: control target
= control target key end

     0   :  { %8 = vsyncpa [#allocation3], 0  ;;  %s198_s0 = inlined_call_operand.hbm [shape: f32[16,32], index: 0, kind: input, shape index: {}]   ;;  %s199_s1 = inlined_call_operand.vmem [shape: f32[1,32], index: 1, kind: input, shape index: {}]   ;;  %s200_s2 = inlined_call_operand.vmem [shape: f32[1,32], index: 2, kind: input, shape index: {}]   ;;  %s201_s3 = inlined_call_operand.hbm [shape: f32[16,32], index: 3, kind: output, shape index: {}]  }
   0x1   :  { %9 = vsyncpa [#allocation4], 0  ;;  %s150_s12 = smov [#allocation2]  }
   0x2   :  { %s15_s13 = sshll.u32 %s150_s12, 4  ;;  %s16_s13 = int_to_ptr.vmem [resolvable:$true] %s15_s13 }
   0x3   :  { %s114_s14 = scalar_lea.vmem %s16_s13, 256  ;;  %p119_p1 = scmp.lt.s32.totalorder %s16_s13, %s16_s13 }
   0x4   :  { %p115_p0 = scmp.ne.s32.totalorder %s16_s13, %s114_s14  ;;  %p120_p2 = scmp.lt.s32.totalorder %s114_s14, %s114_s14 }
   0x6   :  { %p121_p3 = por %p120_p2, %p119_p1 }
   0x8   :  { %p122_p4 = pnand %p121_p3, %p115_p0 }
   0xa   :  { %125 = shalt.err (!%p122_p4)
}
   0xb   :  { %s151_s15 = smov 128   ;;  %s152_s16 = smov 8  }
   0xc   :  { %21 = dma.hbm_to_vmem [thread:$0]  %s198_s0, 256, %s16_s13, [#allocation3], %s151_s15, %s151_s15, %s152_s16  }
   0xd   :  { %146 = dma.done.wait [#allocation3], 256  }
   0xe   :  { %147 = vsyncadd [#allocation3], 4294967040  ;;  %vm31_vm0 = vcmask 261120   ;;  %v29_v0 = vld [vmem:[#allocation2] sm:$0xff]  ;;  %v30_v1 = vld [vmem:[#allocation2 + $0x8] sm:$0xff]  ;;  %s153_s22 = smov [#allocation5]  }
   0xf   :  { %v32_v2 = vsel %vm31_vm0, %v29_v0, 0.0  ;;  %v35_v3 = vsel %vm31_vm0, %v30_v1, 0.0  ;;  %v96_v21 = vld [vmem:[%s199_s1] ss:$0 sm:$0xff]  ;;  %s84_s23 = sshll.u32 %s153_s22, 4  ;;  %s85_s23 = int_to_ptr.vmem [resolvable:$true] %s84_s23 }
  0x10   :  { %33 = vadd.xlane.f32.xlu0 %v32_v2  ;;  %v97_v23 = vld [vmem:[%s200_s2] ss:$0 sm:$0xff]  ;;  %s126_s24 = scalar_lea.vmem %s85_s23, 256  ;;  %p131_p6 = scmp.lt.s32.totalorder %s85_s23, %s85_s23 }
  0x11   :  { %p127_p5 = scmp.ne.s32.totalorder %s85_s23, %s126_s24  ;;  %p132_p7 = scmp.lt.s32.totalorder %s126_s24, %s126_s24 }
  0x13   :  { %p133_p8 = por %p132_p7, %p131_p6 }
  0x14   :  { %36 = vadd.xlane.f32.xlu0 %v35_v3 }
  0x15   :  { %p134_p9 = pnand %p133_p8, %p127_p5 }
  0x99   :  { %v34_v4 = vpop.xlane.xlu0 %33 }
  0x9a   :  { %v39_v5 = vmul.f32 0.03125, %v34_v4 }
  0x9c   :  { %v41_v6 = vsub.f32 %v29_v0, %v39_v5 }
  0x9d   :  { %v37_v7 = vpop.xlane.xlu0 %36 }
  0x9e   :  { %v40_v8 = vmul.f32 0.03125, %v37_v7  ;;  %v43_v9 = vmul.f32 %v41_v6, %v41_v6 }
  0xa0   :  { %v42_v10 = vsub.f32 %v30_v1, %v40_v8  ;;  %v45_v11 = vsel %vm31_vm0, %v43_v9, 0.0 }
  0xa1   :  { %46 = vadd.xlane.f32.xlu1 %v45_v11 }
  0xa2   :  { %v44_v12 = vmul.f32 %v42_v10, %v42_v10 }
  0xa4   :  { %v48_v13 = vsel %vm31_vm0, %v44_v12, 0.0 }
  0xa5   :  { %49 = vadd.xlane.f32.xlu1 %v48_v13 }
 0x12a   :  { %v47_v14 = vpop.xlane.xlu1 %46 }
 0x12b   :  { %v51_v15 = vmul.f32 0.03125, %v47_v14 }
 0x12d   :  { %v53_v16 = vadd.f32 1e-05, %v51_v15 }
 0x12e   :  { %v50_v17 = vpop.xlane.xlu1 %49 }
 0x12f   :  { %102 = vrsqrt.f32 %v53_v16  ;;  %v52_v18 = vmul.f32 0.03125, %v50_v17 }
 0x131   :  { %v54_v19 = vadd.f32 1e-05, %v52_v18 }
 0x133   :  { %104 = vrsqrt.f32 %v54_v19 }
 0x13c   :  { %v103_v20 = vpop.eup %102 }
 0x13d   :  { %v57_v22 = vmul.f32 %v103_v20, %v41_v6 }
 0x13f   :  { %v66_v24 = vmul.f32 %v96_v21, %v57_v22 }
 0x140   :  { %v105_v25 = vpop.eup %104 }
 0x141   :  { %v58_v26 = vmul.f32 %v105_v25, %v42_v10  ;;  %v75_v27 = vadd.f32 %v97_v23, %v66_v24 }
 0x143   :  { %v67_v28 = vmul.f32 %v96_v21, %v58_v26  ;;  %77 = vst.msk [vmem:[#allocation5] sm:$0xff] %vm31_vm0, %v75_v27 }
 0x145   :  { %v76_v29 = vadd.f32 %v97_v23, %v67_v28 }
 0x147   :  { %78 = vst.msk [vmem:[#allocation5 + $0x8] sm:$0xff] %vm31_vm0, %v76_v29 }
 0x148   :  { %137 = shalt.err (!%p134_p9)
}
 0x149   :  { %90 = dma.vmem_to_hbm [thread:$0]  %s85_s23, 256, %s201_s3, [#allocation4], %s151_s15, %s151_s15, %s152_s16  }
 0x14a   :  { %148 = dma.done.wait [#allocation4], 256  }
 0x14b   :  { %149 = vsyncadd [#allocation4], 4294967040 }
 0x14c   :  { %94 = vsyncpa [#allocation3], 1 }
 0x14d   :  { %95 = vsyncpa [#allocation4], 1 }

</bundles_post_ra>
